<compile_context>
chip_gen: v7x
topology: tpu7x:2x2x1
jax: 0.10.0
libtpu: 0.0.40
codegen_flags: <defaults>
</compile_context>

<pallas_src>
import math
import functools

import jax
import jax.numpy as jnp
from jax.experimental import pallas as pl
from jax.experimental.pallas import tpu as pltpu


# ----------------------------------------------------------------------------------
# helpers usable inside kernels
# ----------------------------------------------------------------------------------
def _sigmoid(z):
    # single EUP tanh instead of exp + VALU divide (exact identity), f32 in / f32 out
    return 0.5 * jnp.tanh(0.5 * z) + 0.5


def _ln(x, g, b, eps=1e-5):
    # x: (N, H), g/b: (1, H)  -- PyTorch LayerNorm over last dim (biased variance)
    mu = jnp.mean(x, axis=-1, keepdims=True)
    xc = x - mu
    var = jnp.mean(xc * xc, axis=-1, keepdims=True)
    return xc * jax.lax.rsqrt(var + eps) * g + b


def _pick_chunk(n, cap):
    # Largest chunk c dividing n with c <= cap; prefers c == n (block == full axis) or
    # a multiple of 8 so second-minor block dims stay (8,128)-friendly.
    if n <= cap:
        return n
    best = 0
    c = 8
    while c <= cap:
        if n % c == 0:
            best = c
        c += 8
    return best if best else n


def _pick_batch_block(batch, seq, target_rows=256, max_rows=2048):
    # Largest divisor of `batch` whose BBLK*seq row count stays under max_rows,
    # stopping once target_rows (MXU M-dimension) is reached.
    best = 1
    for bb in range(1, batch + 1):
        if batch % bb:
            continue
        if bb * seq > max_rows and bb > 1:
            break
        best = bb
        if bb * seq >= target_rows:
            break
    return best


def _const_spec(a):
    zeros = (0,) * a.ndim
    return pl.BlockSpec(a.shape, lambda i, _z=zeros: _z)


_VMEM_LIMIT = 64 * 1024 * 1024


# ----------------------------------------------------------------------------------
# LSTM: (1) hoisted input projection, (2) chunked serial recurrence
# ----------------------------------------------------------------------------------
def _lstm_inproj_kernel(x_ref, w_ref, b_ref, o_ref):
    # x_ref: (B, tc, I) native layout  ->  o_ref: (tc, B, 4H) time-major gates.
    # The (B, tc) -> (tc, B) transpose happens in VMEM (no HBM transpose round trip).
    Bb, tc, I = x_ref.shape
    G = o_ref.shape[-1]
    xt = jnp.transpose(x_ref[...], (1, 0, 2)).reshape(tc * Bb, I)
    g = jnp.dot(xt.astype(jnp.bfloat16), w_ref[...],           # bf16 MXU, f32 accum
                preferred_element_type=jnp.float32) + b_ref[...]
    o_ref[...] = g.reshape(tc, Bb, G)


def _lstm_recur_kernel(gx_ref, h0_ref, c0_ref, whh_ref,
                       rout_ref, hn_ref, cn_ref, r_scr,
                       *, hidden, t_chunk, unroll):
    # hn_ref / cn_ref use a constant index_map over the "arbitrary" grid axis, so they
    # stay resident in VMEM across grid steps and act as the h/c carry (accumulator
    # pattern).  Do not change their out_specs / the grid ordering.
    @pl.when(pl.program_id(0) == 0)
    def _():
        hn_ref[...] = h0_ref[...]
        cn_ref[...] = c0_ref[...]

    H = hidden
    whh = whh_ref[...]                               # bf16 recurrent weight, hoisted

    # TODO(synk): with H < 128 the gate slices below cut inside a vreg (masked
    #             selects); pad H to a multiple of 128 at production sizes.
    def step(t, carry):
        h, c = carry
        gates = gx_ref[t] + jnp.dot(h.astype(jnp.bfloat16), whh,
                                    preferred_element_type=jnp.float32)
        i_g = _sigmoid(gates[:, 0:H])                # PyTorch gate order: i, f, g, o
        f_g = _sigmoid(gates[:, H:2 * H])
        g_g = jnp.tanh(gates[:, 2 * H:3 * H])
        o_g = _sigmoid(gates[:, 3 * H:4 * H])
        c_new = f_g * c + i_g * g_g
        h_new = o_g * jnp.tanh(c_new)
        r_scr[t] = h_new
        return h_new, c_new

    # bounded unroll: keeps LLO scheduling visibility without vreg spills at large H
    h_fin, c_fin = jax.lax.fori_loop(
        0, t_chunk, step, (hn_ref[...], cn_ref[...]), unroll=unroll)
    hn_ref[...] = h_fin
    cn_ref[...] = c_fin
    # write r_out in (B, tc, H) layout so the transformer consumes it transpose-free
    rout_ref[...] = jnp.transpose(r_scr[...], (1, 0, 2))


def lstm_forward(x_bsi, h0, c0, w_ih, w_hh, b):
    # x_bsi: (B, S, I); h0/c0: (B, H); returns r_out (B, S, H), h_n, c_n (B, H)
    B, S, I = x_bsi.shape
    H = h0.shape[-1]
    w_ih_bf = w_ih.astype(jnp.bfloat16)
    w_hh_bf = w_hh.astype(jnp.bfloat16)

    # (1) gates_x = x @ W_ih + b for all timesteps at once (off the serial path),
    #     chunked by target row count (tc * B rows per grid step).
    tc_p = _pick_chunk(S, max(8, 2048 // max(B, 1)))
    gx = pl.pallas_call(
        _lstm_inproj_kernel,
        grid=(S // tc_p,),
        in_specs=[
            pl.BlockSpec((B, tc_p, I), lambda i: (0, i, 0)),
            pl.BlockSpec((I, 4 * H), lambda i: (0, 0)),
            pl.BlockSpec((1, 4 * H), lambda i: (0, 0)),
        ],
        out_specs=pl.BlockSpec((tc_p, B, 4 * H), lambda i: (i, 0, 0)),
        out_shape=jax.ShapeDtypeStruct((S, B, 4 * H), jnp.float32),
        compiler_params=pltpu.CompilerParams(
            dimension_semantics=("parallel",),
            vmem_limit_bytes=_VMEM_LIMIT),
    )(x_bsi, w_ih_bf, b)

    # (2) serial recurrence: only h @ W_hh per step, tc_r timesteps per grid step,
    #     h/c carried in resident output blocks.
    tc_r = _pick_chunk(S, 64)
    unroll = max(1, min(4, tc_r))
    r_out, h_n, c_n = pl.pallas_call(
        functools.partial(_lstm_recur_kernel, hidden=H, t_chunk=tc_r, unroll=unroll),
        grid=(S // tc_r,),
        in_specs=[
            pl.BlockSpec((tc_r, B, 4 * H), lambda i: (i, 0, 0)),
            pl.BlockSpec((B, H), lambda i: (0, 0)),
            pl.BlockSpec((B, H), lambda i: (0, 0)),
            pl.BlockSpec((H, 4 * H), lambda i: (0, 0)),
        ],
        out_specs=[
            pl.BlockSpec((B, tc_r, H), lambda i: (0, i, 0)),
            pl.BlockSpec((B, H), lambda i: (0, 0)),
            pl.BlockSpec((B, H), lambda i: (0, 0)),
        ],
        out_shape=[
            jax.ShapeDtypeStruct((B, S, H), jnp.float32),
            jax.ShapeDtypeStruct((B, H), jnp.float32),
            jax.ShapeDtypeStruct((B, H), jnp.float32),
        ],
        scratch_shapes=[pltpu.VMEM((tc_r, B, H), jnp.float32)],
        compiler_params=pltpu.CompilerParams(
            dimension_semantics=("arbitrary",),
            vmem_limit_bytes=_VMEM_LIMIT),
    )(gx, h0, c0, w_hh_bf)
    return r_out, h_n, c_n


# ----------------------------------------------------------------------------------
# Transformer encoder: ONE fused kernel (embed + all layers + final LN), grid = batch
# ----------------------------------------------------------------------------------
def _encoder_kernel(x_ref, pos_ref, vecs_ref, bf1_ref, fvec_ref,
                    wqkv_ref, wo_ref, w1_ref, w2_ref, o_ref,
                    *, num_heads, num_layers, embed_scale):
    BBLK, S, H = x_ref.shape
    nh = num_heads
    hd = H // nh
    M = BBLK * S
    scaling = float(hd) ** -0.5
    bf16 = jnp.bfloat16

    # fused encoder embed: scale + sinusoidal positions (embed_dropout = identity)
    x = embed_scale * x_ref[...] + pos_ref[...][None, :, :]
    x = x.reshape(M, H)                          # flatten: MXU sees BBLK*S rows

    def split_heads(m):                          # (M, H) -> (BBLK*nh, S, hd)
        return jnp.transpose(m.reshape(BBLK, S, nh, hd),
                             (0, 2, 1, 3)).reshape(BBLK * nh, S, hd)

    def merge_heads(c):                          # (BBLK*nh, S, hd) -> (M, H)
        return jnp.transpose(c.reshape(BBLK, nh, S, hd),
                             (0, 2, 1, 3)).reshape(M, H)

    for li in range(num_layers):
        v = vecs_ref[li]        # (9, H) f32: ln0_g, ln0_b, bq, bk, bv, bo, ln1_g, ln1_b, bf2
        b1 = bf1_ref[li]        # (1, 4H) f32
        wqkv = wqkv_ref[li]     # (H, 3H) bf16
        wo = wo_ref[li]         # (H,  H) bf16
        w1 = w1_ref[li]         # (H, 4H) bf16
        w2 = w2_ref[li]         # (4H, H) bf16

        # ---- pre-LN multi-head self-attention (unmasked: attn_mask=False) ----
        xn = _ln(x, v[0:1], v[1:2])
        qkv = jnp.dot(xn.astype(bf16), wqkv, preferred_element_type=jnp.float32)
        q = split_heads((qkv[:, 0:H] + v[2:3]) * scaling)
        k = split_heads(qkv[:, H:2 * H] + v[3:4])
        val = split_heads(qkv[:, 2 * H:3 * H] + v[4:5])

        sc = jnp.einsum('bqd,bkd->bqk', q.astype(bf16), k.astype(bf16),
                        preferred_element_type=jnp.float32)
        sc = sc - jnp.max(sc, axis=-1, keepdims=True)
        p = jnp.exp(sc)
        # attn_dropout is identity; approx reciprocal (EUP) deviates ~1e-3 from exact
        p = p * pl.reciprocal(jnp.sum(p, axis=-1, keepdims=True), approx=True)
        ctx = jnp.einsum('bqk,bkd->bqd', p.astype(bf16), val.astype(bf16),
                         preferred_element_type=jnp.float32)

        attn = jnp.dot(merge_heads(ctx).astype(bf16), wo,
                       preferred_element_type=jnp.float32) + v[5:6]
        x = x + attn                              # res_dropout: identity

        # ---- pre-LN position-wise FFN ----
        xn = _ln(x, v[6:7], v[7:8])
        h1 = jnp.maximum(jnp.dot(xn.astype(bf16), w1,
                                 preferred_element_type=jnp.float32) + b1, 0.0)
        x = x + (jnp.dot(h1.astype(bf16), w2,
                         preferred_element_type=jnp.float32) + v[8:9])

    # fused final encoder LayerNorm
    x = _ln(x, fvec_ref[0:1], fvec_ref[1:2])
    o_ref[...] = x.reshape(BBLK, S, H)


def sinusoidal_pos_embedding(seq_len, dim):
    # fairseq-style table, positions = padding_idx+1 .. padding_idx+S (padding_idx=0;
    # the float LSTM outputs are never exactly 0, so no position is masked).
    half = dim // 2
    denom = max(half - 1, 1)
    freqs = jnp.exp(jnp.arange(half, dtype=jnp.float32) * -(math.log(10000.0) / denom))
    positions = jnp.arange(1, seq_len + 1, dtype=jnp.float32)
    args = positions[:, None] * freqs[None, :]
    emb = jnp.concatenate([jnp.sin(args), jnp.cos(args)], axis=1)
    if dim % 2 == 1:
        emb = jnp.concatenate([emb, jnp.zeros((seq_len, 1), jnp.float32)], axis=1)
    return emb  # (S, dim)


def transformer_encoder(x_bsh, layer_params, ln_f_g, ln_f_b, num_heads):
    # x_bsh: (B, S, H) batch-major LSTM output (no HBM transpose needed).
    B, S, H = x_bsh.shape
    L = len(layer_params)
    assert L >= 1

    # pack per-layer small vectors and stack bf16 weights (one-time XLA work)
    vec_rows, bf1_rows, wq_l, wo_l, w1_l, w2_l = [], [], [], [], [], []
    for (g0, b0, wqkv, bqkv, wo, bo, g1, b1n, w1, bf1, w2, bf2) in layer_params:
        bqkv3 = bqkv.reshape(3, H)                         # rows: bq, bk, bv
        vec_rows.append(jnp.concatenate([g0, b0, bqkv3, bo, g1, b1n, bf2], axis=0))
        bf1_rows.append(bf1)
        wq_l.append(wqkv); wo_l.append(wo); w1_l.append(w1); w2_l.append(w2)
    vecs = jnp.stack(vec_rows)                             # (L, 9, H)  f32
    bf1s = jnp.stack(bf1_rows)                             # (L, 1, 4H) f32
    wqkv_all = jnp.stack(wq_l).astype(jnp.bfloat16)        # (L, H, 3H)
    wo_all = jnp.stack(wo_l).astype(jnp.bfloat16)          # (L, H, H)
    w1_all = jnp.stack(w1_l).astype(jnp.bfloat16)          # (L, H, 4H)
    w2_all = jnp.stack(w2_l).astype(jnp.bfloat16)          # (L, 4H, H)
    fvec = jnp.concatenate([ln_f_g, ln_f_b], axis=0)       # (2, H)

    pos = sinusoidal_pos_embedding(S, H)                   # (S, H), shared per batch
    embed_scale = math.sqrt(H)
    BBLK = _pick_batch_block(B, S)

    kernel = functools.partial(_encoder_kernel, num_heads=num_heads,
                               num_layers=L, embed_scale=embed_scale)
    consts = (pos, vecs, bf1s, fvec, wqkv_all, wo_all, w1_all, w2_all)
    act_spec = pl.BlockSpec((BBLK, S, H), lambda bb: (bb, 0, 0))

    out = pl.pallas_call(
        kernel,
        grid=(B // BBLK,),
        in_specs=[act_spec] + [_const_spec(a) for a in consts],
        out_specs=act_spec,
        out_shape=jax.ShapeDtypeStruct((B, S, H), jnp.float32),
        compiler_params=pltpu.CompilerParams(
            dimension_semantics=("parallel",),
            vmem_limit_bytes=_VMEM_LIMIT),
    )(x_bsh, *consts)
    return out   # (B, S, H) == transformer(r_out).transpose(0, 1)


# ----------------------------------------------------------------------------------
# Full module forward + deterministic parameter init
# ----------------------------------------------------------------------------------
def lstm_transformer_forward(params, x, states):
    # x: (B, S, input_dim); states = (h0, c0), each (1, B, H) as in nn.LSTM.
    h0, c0 = states
    r_out, h_n, c_n = lstm_forward(x, h0[0], c0[0],
                                   params["w_ih"], params["w_hh"], params["b_lstm"])
    # rnn_dropout is identity in eval mode; r_out is already (B, S, H), so the
    # module's transpose(0,1) / transpose(0,1) pair is absorbed by the layout choice.
    out = transformer_encoder(r_out, params["layers"], params["ln_f_g"], params["ln_f_b"],
                              num_heads=params["num_heads"])
    return out, (h_n[None], c_n[None])


def init_params(key, input_dim, hidden, num_heads, num_layers):
    s = 0.1
    keys = jax.random.split(key, 3 + num_layers)
    p = {
        "num_heads": num_heads,
        # LSTM: [in, out] layout, gate order i|f|g|o, combined bias (b_ih + b_hh)
        "w_ih": s * jax.random.normal(keys[0], (input_dim, 4 * hidden), jnp.float32),
        "w_hh": s * jax.random.normal(keys[1], (hidden, 4 * hidden), jnp.float32),
        "b_lstm": s * jax.random.normal(keys[2], (1, 4 * hidden), jnp.float32),
    }
    layers = []
    for l in range(num_layers):
        lk = jax.random.split(keys[3 + l], 8)
        layers.append((
            jnp.ones((1, hidden), jnp.float32),                               # ln0 gamma
            jnp.zeros((1, hidden), jnp.float32),                              # ln0 beta
            s * jax.random.normal(lk[0], (hidden, 3 * hidden), jnp.float32),  # Wqkv
            s * jax.random.normal(lk[1], (1, 3 * hidden), jnp.float32),       # bqkv
            s * jax.random.normal(lk[2], (hidden, hidden), jnp.float32),      # Wout
            s * jax.random.normal(lk[3], (1, hidden), jnp.float32),           # bout
            jnp.ones((1, hidden), jnp.float32),                               # ln1 gamma
            jnp.zeros((1, hidden), jnp.float32),                              # ln1 beta
            s * jax.random.normal(lk[4], (hidden, 4 * hidden), jnp.float32),  # fc1 W
            s * jax.random.normal(lk[5], (1, 4 * hidden), jnp.float32),       # fc1 b
            s * jax.random.normal(lk[6], (4 * hidden, hidden), jnp.float32),  # fc2 W
            s * jax.random.normal(lk[7], (1, hidden), jnp.float32),           # fc2 b
        ))
    p["layers"] = layers
    p["ln_f_g"] = jnp.ones((1, hidden), jnp.float32)   # final encoder LayerNorm
    p["ln_f_b"] = jnp.zeros((1, hidden), jnp.float32)
    return p


if __name__ == "__main__":
    B, S, INPUT_DIM = 2, 8, 4
    HIDDEN, NUM_HEADS, NUM_LAYERS = 32, 4, 2

    key = jax.random.PRNGKey(0)
    k_x, k_h, k_c, k_p = jax.random.split(key, 4)
    x = jax.random.normal(k_x, (B, S, INPUT_DIM), jnp.float32)
    h0 = 0.1 * jax.random.normal(k_h, (1, B, HIDDEN), jnp.float32)
    c0 = 0.1 * jax.random.normal(k_c, (1, B, HIDDEN), jnp.float32)

    params = init_params(k_p, INPUT_DIM, HIDDEN, NUM_HEADS, NUM_LAYERS)

    out, (h_n, c_n) = lstm_transformer_forward(params, x, (h0, c0))
    jax.block_until_ready((out, h_n, c_n))

    assert out.shape == (B, S, HIDDEN)
    assert h_n.shape == (1, B, HIDDEN) and c_n.shape == (1, B, HIDDEN)
    assert bool(jnp.all(jnp.isfinite(out)))
    print("KERNEL_OK")
</pallas_src>

<mosaic_0001>
module attributes {stable_mosaic.version = 11 : i64} {
  func.func @_lstm_inproj_kernel(%arg0: i32, %arg1: memref<2x8x4xf32, #tpu.memory_space<vmem>>, %arg2: memref<4x128xbf16, #tpu.memory_space<vmem>>, %arg3: memref<1x128xf32, #tpu.memory_space<vmem>>, %arg4: memref<8x2x128xf32, #tpu.memory_space<vmem>>) attributes {dimension_semantics = [#tpu.dimension_semantics<parallel>], iteration_bounds = array<i64: 1>, scalar_prefetch = 0 : i64, scratch_operands = 0 : i64, tpu.core_type = #tpu.core_type<tc>, window_params = [{transform_indices = @transform_0, window_bounds = array<i64: 2, 8, 4>}, {pipeline_mode = #tpu.pipeline_mode<synchronous>, transform_indices = @transform_1, window_bounds = array<i64: 4, 128>}, {pipeline_mode = #tpu.pipeline_mode<synchronous>, transform_indices = @transform_2, window_bounds = array<i64: 1, 128>}, {transform_indices = @transform_3, window_bounds = array<i64: 8, 2, 128>}]} {
    %c0 = arith.constant 0 : index
    %c0_0 = arith.constant 0 : index
    %c0_1 = arith.constant 0 : index
    %0 = vector.load %arg1[%c0, %c0_0, %c0_1] : memref<2x8x4xf32, #tpu.memory_space<vmem>>, vector<2x8x4xf32>
    %1 = tpu.transpose %0, [1, 0, 2] : vector<2x8x4xf32> -> vector<8x2x4xf32>
    %2 = vector.shape_cast %1 : vector<8x2x4xf32> to vector<16x4xf32>
    %3 = arith.truncf %2 : vector<16x4xf32> to vector<16x4xbf16>
    %c0_2 = arith.constant 0 : index
    %c0_3 = arith.constant 0 : index
    %4 = vector.load %arg2[%c0_2, %c0_3] : memref<4x128xbf16, #tpu.memory_space<vmem>>, vector<4x128xbf16>
    %cst = arith.constant dense<0.000000e+00> : vector<16x128xf32>
    %5 = tpu.matmul %3, %4, %cst {dimension_numbers = #tpu.dot_dimension_numbers<[1], [0], [0], [1], [0, 0, 1, 1], [], []>} : vector<16x4xbf16>, vector<4x128xbf16>, vector<16x128xf32> -> vector<16x128xf32>
    %c0_4 = arith.constant 0 : index
    %c0_5 = arith.constant 0 : index
    %6 = vector.load %arg3[%c0_4, %c0_5] : memref<1x128xf32, #tpu.memory_space<vmem>>, vector<1x128xf32>
    %7 = vector.broadcast %6 : vector<1x128xf32> to vector<16x128xf32>
    %8 = arith.addf %5, %7 : vector<16x128xf32>
    %9 = vector.shape_cast %8 : vector<16x128xf32> to vector<8x2x128xf32>
    %c0_6 = arith.constant 0 : index
    %c0_7 = arith.constant 0 : index
    %c0_8 = arith.constant 0 : index
    %10 = vector.load %arg4[%c0_6, %c0_7, %c0_8] : memref<8x2x128xf32, #tpu.memory_space<vmem>>, vector<8x2x128xf32>
    tpu.vector_store %arg4[%c0_6, %c0_7, %c0_8], %9 {strides = array<i32>} : memref<8x2x128xf32, #tpu.memory_space<vmem>>, vector<8x2x128xf32>,
    return
  }
  func.func @transform_0(%arg0: i32) -> (i32, i32, i32) {
    %c0_i32 = arith.constant 0 : i32
    %c0_i32_0 = arith.constant 0 : i32
    %c0_i32_1 = arith.constant 0 : i32
    return %c0_i32, %arg0, %c0_i32_0 : i32, i32, i32
  }
  func.func @transform_1(%arg0: i32) -> (i32, i32) {
    %c0_i32 = arith.constant 0 : i32
    %c0_i32_0 = arith.constant 0 : i32
    %c0_i32_1 = arith.constant 0 : i32
    return %c0_i32, %c0_i32_0 : i32, i32
  }
  func.func @transform_2(%arg0: i32) -> (i32, i32) {
    %c0_i32 = arith.constant 0 : i32
    %c0_i32_0 = arith.constant 0 : i32
    %c0_i32_1 = arith.constant 0 : i32
    return %c0_i32, %c0_i32_0 : i32, i32
  }
  func.func @transform_3(%arg0: i32) -> (i32, i32, i32) {
    %c0_i32 = arith.constant 0 : i32
    %c0_i32_0 = arith.constant 0 : i32
    %c0_i32_1 = arith.constant 0 : i32
    return %arg0, %c0_i32, %c0_i32_0 : i32, i32, i32
  }
}

</mosaic_0001>

<bundles_post_ra>
// kernel: tpu_custom_call.1
= control target key start
LH: loop header
LB: loop body
LE: loop exit
PB: predicated region body
PF: predicated region fallthrough
CT: control target
= control target key end

     0   :  { %8 = vsyncpa [#allocation3], 0  ;;  %s500_s0 = inlined_call_operand.hbm [shape: f32[2,8,4], index: 0, kind: input, shape index: {}]   ;;  %s501_s1 = inlined_call_operand.hbm [shape: bf16[4,128], index: 1, kind: input, shape index: {}]   ;;  %s502_s2 = inlined_call_operand.hbm [shape: f32[1,128], index: 2, kind: input, shape index: {}]   ;;  %s503_s3 = inlined_call_operand.hbm [shape: f32[8,2,128], index: 3, kind: output, shape index: {}]  }
   0x1   :  { %9 = vsyncpa [#allocation6], 0 }
   0x2   :  { %10 = vsyncpa [#allocation4], 0  ;;  %s413_s12 = smov [#allocation5]   ;;  %s414_s14 = smov [#allocation2]  }
   0x3   :  { %s29_s13 = sshll.u32 %s413_s12, 4  ;;  %s16_s15 = sshll.u32 %s414_s14, 4  ;;  %s30_s13 = int_to_ptr.vmem [resolvable:$true] %s29_s13  ;;  %s445_s15 = int_to_ptr.vmem [resolvable:$true] %s16_s15 }
   0x4   :  { %s319_s18 = scalar_lea.hbm %s501_s1, 32 }
   0x5   :  { %p320_p0 = scmp.ne.s32.totalorder %s501_s1, %s319_s18  ;;  %p323_p1 = scmp.lt.u32.totalorder %s319_s18, %s501_s1 }
   0x7   :  { %p325_p2 = pnand %p323_p1, %p320_p0 }
   0x9   :  { %328 = shalt.err (!%p325_p2)
}
   0xa   :  { %s329_s23 = scalar_lea.vmem %s30_s13, 32  ;;  %p334_p4 = scmp.lt.s32.totalorder %s30_s13, %s30_s13 }
   0xb   :  { %p330_p3 = scmp.ne.s32.totalorder %s30_s13, %s329_s23  ;;  %p335_p5 = scmp.lt.s32.totalorder %s329_s23, %s329_s23 }
   0xd   :  { %p336_p6 = por %p335_p5, %p334_p4 }
   0xf   :  { %p337_p7 = pnand %p336_p6, %p330_p3 }
  0x11   :  { %340 = shalt.err (!%p337_p7)
}
  0x12   :  { %32 = dma.hbm_to_vmem [thread:$0]  %s501_s1, 32, %s30_s13, [#allocation6]  }
  0x13   :  { %s341_s28 = scalar_lea.hbm %s500_s0, 256 }
  0x14   :  { %p342_p8 = scmp.ne.s32.totalorder %s500_s0, %s341_s28  ;;  %p345_p9 = scmp.lt.u32.totalorder %s341_s28, %s500_s0 }
  0x16   :  { %p347_p10 = pnand %p345_p9, %p342_p8 }
  0x18   :  { %350 = shalt.err (!%p347_p10)
}
  0x19   :  { %s351_s6 = scalar_lea.vmem %s445_s15, 256  ;;  %p356_p12 = scmp.lt.s32.totalorder %s445_s15, %s445_s15 }
  0x1a   :  { %p352_p11 = scmp.ne.s32.totalorder %s445_s15, %s351_s6  ;;  %p357_p13 = scmp.lt.s32.totalorder %s351_s6, %s351_s6 }
  0x1c   :  { %p358_p0 = por %p357_p13, %p356_p12 }
  0x1e   :  { %p359_p1 = pnand %p358_p0, %p352_p11 }
  0x20   :  { %362 = shalt.err (!%p359_p1)
}
  0x21   :  { %s415_s1 = smov 128   ;;  %s416_s7 = smov 8  }
  0x22   :  { %22 = dma.hbm_to_vmem [thread:$0]  %s500_s0, 256, %s445_s15, [#allocation3], %s415_s1, %s415_s1, %s416_s7  }
  0x23   :  { %s417_s10 = smov [#allocation7]   ;;  %s363_s14 = scalar_lea.hbm %s502_s2, 16 }
  0x24   :  { %s39_s11 = sshll.u32 %s417_s10, 4  ;;  %p364_p2 = scmp.ne.s32.totalorder %s502_s2, %s363_s14  ;;  %s40_s11 = int_to_ptr.vmem [resolvable:$true] %s39_s11 }
  0x25   :  { %p367_p3 = scmp.lt.u32.totalorder %s363_s14, %s502_s2 }
  0x27   :  { %p369_p4 = pnand %p367_p3, %p364_p2 }
  0x29   :  { %372 = shalt.err (!%p369_p4)
}
  0x2a   :  { %s373_s20 = scalar_lea.vmem %s40_s11, 16  ;;  %s377_s0 = scalar_lea.vmem %s40_s11, 32 }
  0x2b   :  { %p374_p5 = scmp.ne.s32.totalorder %s40_s11, %s373_s20  ;;  %p378_p6 = scmp.lt.s32.totalorder %s40_s11, %s40_s11 }
  0x2c   :  { %p379_p7 = scmp.lt.s32.totalorder %s377_s0, %s373_s20 }
  0x2e   :  { %p380_p8 = por %p379_p7, %p378_p6 }
  0x30   :  { %p381_p9 = pnand %p380_p8, %p374_p5 }
  0x32   :  { %384 = shalt.err (!%p381_p9)
}
  0x33   :  { %42 = dma.hbm_to_vmem [thread:$0]  %s502_s2, 16, %s40_s11, [#allocation6]  }
  0x34   :  { %407 = dma.done.wait [#allocation3], 256  }
  0x35   :  { %408 = vsyncadd [#allocation3], 4294967040 }
  0x36   :  { %409 = dma.done.wait [#allocation6], 48  }
  0x37   :  { %410 = vsyncadd [#allocation6], 4294967248  ;;  %v59_v0 = vlaneseq  ;;  %v418_v1 = vmov 0.0   ;;  %vm419_vm0 = vmmov 0   ;;  %v420_v2 = vmov 1983009808  }
  0x38   :  { %301 = vmatprep.subr.bf16.mxu0 %v418_v1  ;;  %303 = vmatprep.mubr.msk.bf16.mxu0 %vm419_vm0, %v418_v1  ;;  %v57_v3 = vunpack.c.l.s4 %v420_v2  ;;  %v421_v5 = vmov 1934713408   ;;  %vm178_vm1 = vcmask 1041408   ;;  %v166_v10 = vld [vmem:[#allocation5] sm:$0x3]  ;;  %v53_v11 = vld [vmem:[#allocation2] sm:$0xff] }
  0x39   :  { %v60_v4 = vshrl.u32 %v59_v0, 7  ;;  %v88_v6 = vunpack.c.l.s4 %v421_v5  ;;  %v54_v12 = vld [vmem:[#allocation2 + $0x8] sm:$0xff]  ;;  %v180_v13 = vsel %vm178_vm1, %v166_v10, 0  ;;  %v55_v14 = vcombine.high %v53_v11, %v418_v1  ;;  %v293_v44 = vld [vmem:[#allocation7] ss:$0 sm:$0xff]  ;;  %s422_s2 = smov [#allocation8]  }
  0x3a   :  { %v58_v7 = vunpack.c.0.s8 %v57_v3  ;;  %v70_v16 = vcombine.high %v54_v12, %v418_v1  ;;  %302 = vmatpush3.bf16.msra.mxu0 %v180_v13  ;;  %vm174_vm2 = vcmask 31744   ;;  %s280_s22 = sshll.u32 %s422_s2, 4  ;;  %s281_s22 = int_to_ptr.vmem [resolvable:$true] %s280_s22 }
  0x3b   :  { %v89_v8 = vunpack.c.0.s8 %v88_v6  ;;  %s385_s23 = scalar_lea.vmem %s281_s22, 256  ;;  %p390_p11 = scmp.lt.s32.totalorder %s281_s22, %s281_s22 }
  0x3c   :  { %v61_v9 = vsub.s32 %v58_v7, %v60_v4  ;;  %p386_p10 = scmp.ne.s32.totalorder %s281_s22, %s385_s23  ;;  %p391_p12 = scmp.lt.s32.totalorder %s385_s23, %s385_s23 }
  0x3d   :  { %v92_v18 = vsub.s32 %v89_v8, %v60_v4 }
  0x3e   :  { %v62_v15 = vrot.slane %v53_v11, %v61_v9  ;;  %v77_v17 = vrot.slane %v54_v12, %v61_v9  ;;  %v69_v19 = vrot.slane %v55_v14, %v61_v9  ;;  %v84_v20 = vrot.slane %v70_v16, %v61_v9  ;;  %p392_p13 = por %p391_p12, %p390_p11 }
  0x40   :  { %v85_v21 = vcombine.low %v62_v15, %v77_v17  ;;  %v86_v22 = vcombine.high %v62_v15, %v77_v17  ;;  %v101_v23 = vcombine.low %v69_v19, %v84_v20  ;;  %v102_v24 = vcombine.high %v69_v19, %v84_v20  ;;  %p393_p0 = pnand %p392_p13, %p386_p10 }
  0x42   :  { %v93_v25 = vrot.slane %v85_v21, %v92_v18  ;;  %v100_v26 = vrot.slane %v86_v22, %v92_v18  ;;  %v109_v27 = vrot.slane %v101_v23, %v92_v18  ;;  %v116_v28 = vrot.slane %v102_v24, %v92_v18 }
  0x44   :  { %v117_v29 = vcombine.high %v93_v25, %v418_v1  ;;  %v118_v30 = vcombine.high %v100_v26, %v418_v1  ;;  %v119_v31 = vcombine.high %v109_v27, %v418_v1  ;;  %v120_v32 = vcombine.high %v116_v28, %v418_v1 }
  0x46   :  { %v129_v33 = vcombine.low %v93_v25, %v117_v29  ;;  %v130_v34 = vcombine.low %v100_v26, %v118_v30  ;;  %v146_v35 = vcombine.low %v109_v27, %v119_v31  ;;  %v147_v36 = vcombine.low %v116_v28, %v120_v32 }
  0x48   :  { %v137_v37 = vrot.slane %v129_v33, %v61_v9  ;;  %v144_v38 = vrot.slane %v130_v34, %v61_v9  ;;  %v154_v39 = vrot.slane %v146_v35, %v61_v9  ;;  %v161_v40 = vrot.slane %v147_v36, %v61_v9 }
  0x4a   :  { %v145_v41 = vcombine.low %v137_v37, %v144_v38  ;;  %v162_v42 = vcombine.low %v154_v39, %v161_v40 }
  0x4c   :  { %v165_v43 = vpack.c.bf16 %v162_v42, %v145_v41 }
  0x4e   :  { %304 = vmatmul.mubr.msk.bf16.vlgmr.msra.gmra.mrb[0].mxu0 %vm174_vm2, %v165_v43 }
 0x121   :  { %v216_v45 = vpop.f32.mrb[0].mxu0 }
 0x122   :  { %v217_v46 = vadd.f32 %v293_v44, %v216_v45  ;;  %v305_v47 = vpop.f32.mrb[1].mxu0 }
 0x123   :  { %v219_v48 = vpop.f32.mrb[2].mxu0 }
 0x124   :  { %v225_v49 = vcombine.high %v217_v46, %v217_v46  ;;  %v232_v50 = vrot.slane %v217_v46, %v61_v9  ;;  %295 = vst.sshfl [vmem:[#allocation8] sm:$0x3 pattern:$0x76325410] %v217_v46  ;;  %v220_v51 = vadd.f32 %v293_v44, %v219_v48  ;;  %v306_v52 = vpop.f32.mrb[3].mxu0 }
 0x126   :  { %v239_v53 = vrot.slane %v225_v49, %v61_v9  ;;  %v240_v54 = vcombine.high %v232_v50, %v232_v50  ;;  %296 = vst.sshfl [vmem:[#allocation8 + $0x4] sm:$0x3 pattern:$0x76325410] %v225_v49  ;;  %v242_v55 = vcombine.high %v220_v51, %v220_v51  ;;  %v249_v56 = vrot.slane %v220_v51, %v61_v9 }
 0x127   :  { %297 = vst.sshfl [vmem:[#allocation8 + $0x8] sm:$0x3 pattern:$0x76325410] %v220_v51 }
 0x128   :  { %v241_v57 = vcombine.high %v239_v53, %v239_v53  ;;  %268 = vst [vmem:[#allocation8 + $0x2] sm:$0x3] %v240_v54  ;;  %v256_v58 = vrot.slane %v242_v55, %v61_v9  ;;  %v257_v59 = vcombine.high %v249_v56, %v249_v56  ;;  %298 = vst.sshfl [vmem:[#allocation8 + $0xc] sm:$0x3 pattern:$0x76325410] %v242_v55 }
 0x12a   :  { %270 = vst [vmem:[#allocation8 + $0x6] sm:$0x3] %v241_v57  ;;  %v258_v60 = vcombine.high %v256_v58, %v256_v58  ;;  %272 = vst [vmem:[#allocation8 + $0xa] sm:$0x3] %v257_v59 }
 0x12c   :  { %274 = vst [vmem:[#allocation8 + $0xe] sm:$0x3] %v258_v60 }
 0x12d   :  { %396 = shalt.err (!%p393_p0)
}
 0x12e   :  { %s397_s26 = scalar_lea.hbm %s503_s3, 256 }
 0x12f   :  { %p398_p1 = scmp.ne.s32.totalorder %s503_s3, %s397_s26  ;;  %p401_p2 = scmp.lt.u32.totalorder %s397_s26, %s503_s3 }
 0x131   :  { %p403_p3 = pnand %p401_p2, %p398_p1 }
 0x133   :  { %406 = shalt.err (!%p403_p3)
}
 0x134   :  { %s423_s4 = smov 32   ;;  %s424_s5 = smov 2  }
 0x135   :  { %286 = dma.vmem_to_hbm [thread:$0]  %s281_s22, 256, %s503_s3, [#allocation4], %s423_s4, %s423_s4, %s424_s5  }
 0x136   :  { %411 = dma.done.wait [#allocation4], 256  }
 0x137   :  { %412 = vsyncadd [#allocation4], 4294967040 }
 0x138   :  { %290 = vsyncpa [#allocation3], 1 }
 0x139   :  { %291 = vsyncpa [#allocation6], 1 }
 0x13a   :  { %292 = vsyncpa [#allocation4], 1 }

</bundles_post_ra>
